<compile_context>
chip_gen: v7x
topology: tpu7x:2x2x1
jax: 0.10.0
libtpu: 0.0.40
codegen_flags: <defaults>
</compile_context>

<pallas_src>
import functools

import jax
import jax.numpy as jnp
from jax.experimental import pallas as pl
from jax.experimental.pallas import tpu as pltpu

Z_DIM = 100
DATA_DIM = 50
H1 = DATA_DIM * 2          # 100
H2 = int(DATA_DIM * 1.5)   # 75
BN_EPS = 1e-5
LANE = 128                 # all feature dims are padded to one full lane tile


def generator_kernel(z_ref, w1_ref, w2_ref, w3_ref, bn_ref, o_ref,
                     s1_ref, s2_ref, *, n_rows, block_m):
    """Grid = (3 passes, batch tiles).  s1/s2 hold [sum; sum_sq] per feature."""
    pass_id = pl.program_id(0)
    tile_id = pl.program_id(1)
    inv_n = 1.0 / float(n_rows)
    needs_mask = (n_rows % block_m) != 0  # static

    # Packed small params: rows = [gamma1, beta1, gamma2, beta2, b3, 0, 0, 0]
    g1 = bn_ref[0:1, :]
    be1 = bn_ref[1:2, :]
    g2 = bn_ref[2:3, :]
    be2 = bn_ref[3:4, :]
    b3 = bn_ref[4:5, :]

    def mask_rows(h):
        # Zero out zero-padded tail rows so they never pollute batch statistics.
        if not needs_mask:
            return h
        row = jax.lax.broadcasted_iota(jnp.int32, (block_m, 1), 0) + tile_id * block_m
        return h * (row < n_rows).astype(h.dtype)

    def accumulate(h, s_ref):
        hm = mask_rows(h)
        tile_stats = jnp.concatenate(
            [jnp.sum(hm, axis=0, keepdims=True),
             jnp.sum(hm * hm, axis=0, keepdims=True)], axis=0)  # (2, LANE)

        @pl.when(tile_id == 0)
        def _():
            s_ref[...] = jnp.zeros_like(s_ref)

        s_ref[...] += tile_stats

    def bn_relu(h, s_ref, gamma, beta):
        mu = s_ref[0:1, :] * inv_n
        var = s_ref[1:2, :] * inv_n - mu * mu       # biased variance (PyTorch training)
        hn = (h - mu) * jax.lax.rsqrt(var + BN_EPS)
        return jnp.maximum(hn * gamma + beta, 0.0)

    def layer1():
        # Linear without bias: the bias cancels under BatchNorm.
        return jnp.dot(z_ref[...], w1_ref[...], preferred_element_type=jnp.float32)

    def layer2(h1n):
        return jnp.dot(h1n.astype(jnp.bfloat16), w2_ref[...],
                       preferred_element_type=jnp.float32)

    # Keep the intermediate HBM write-backs of the output deterministic
    # (pass 2 overwrites them with the real values last).
    @pl.when(pass_id < 2)
    def _zero_out():
        o_ref[...] = jnp.zeros_like(o_ref)

    @pl.when(pass_id == 0)
    def _pass0():
        accumulate(layer1(), s1_ref)

    @pl.when(pass_id == 1)
    def _pass1():
        h1n = bn_relu(layer1(), s1_ref, g1, be1)
        accumulate(layer2(h1n), s2_ref)

    @pl.when(pass_id == 2)
    def _pass2():
        h1n = bn_relu(layer1(), s1_ref, g1, be1)
        h2n = bn_relu(layer2(h1n), s2_ref, g2, be2)
        h3 = jnp.dot(h2n.astype(jnp.bfloat16), w3_ref[...],
                     preferred_element_type=jnp.float32) + b3
        o_ref[...] = jax.nn.sigmoid(h3)


def _round_up(x, m):
    return ((x + m - 1) // m) * m


def _pad2d(x, rows, cols, dtype=None):
    x = jnp.asarray(x)
    out = jnp.pad(x, ((0, rows - x.shape[0]), (0, cols - x.shape[1])))
    return out.astype(dtype) if dtype is not None else out


def generator_forward(noise, params, *, block_m=None):
    """noise: [N, Z_DIM] f32; params: dict of weights. Returns [N, DATA_DIM] f32."""
    n = noise.shape[0]
    if block_m is None:
        block_m = min(512, _round_up(n, 8))
    assert block_m % 8 == 0
    n_pad = _round_up(n, block_m)
    num_tiles = n_pad // block_m

    # Lane-pad everything to 128 and cast matmul operands to bf16.
    z = _pad2d(noise, n_pad, LANE, jnp.bfloat16)
    w1 = _pad2d(params["w1"], LANE, LANE, jnp.bfloat16)
    w2 = _pad2d(params["w2"], LANE, LANE, jnp.bfloat16)
    w3 = _pad2d(params["w3"], LANE, LANE, jnp.bfloat16)

    def row(v):
        v = jnp.asarray(v, jnp.float32).reshape(1, -1)
        return jnp.pad(v, ((0, 0), (0, LANE - v.shape[1])))

    bn_packed = jnp.concatenate(
        [row(params["g1"]), row(params["be1"]),
         row(params["g2"]), row(params["be2"]),
         row(params["b3"]),
         jnp.zeros((3, LANE), jnp.float32)], axis=0)            # (8, 128)

    kernel = functools.partial(generator_kernel, n_rows=n, block_m=block_m)

    out_padded = pl.pallas_call(
        kernel,
        out_shape=jax.ShapeDtypeStruct((n_pad, LANE), jnp.float32),
        grid_spec=pltpu.PrefetchScalarGridSpec(
            num_scalar_prefetch=0,
            grid=(3, num_tiles),                                # (pass, batch tile)
            in_specs=[
                pl.BlockSpec((block_m, LANE), lambda p, i: (i, 0)),   # z
                pl.BlockSpec((LANE, LANE), lambda p, i: (0, 0)),      # w1 (resident)
                pl.BlockSpec((LANE, LANE), lambda p, i: (0, 0)),      # w2 (resident)
                pl.BlockSpec((LANE, LANE), lambda p, i: (0, 0)),      # w3 (resident)
                pl.BlockSpec((8, LANE), lambda p, i: (0, 0)),         # packed BN params
            ],
            out_specs=pl.BlockSpec((block_m, LANE), lambda p, i: (i, 0)),
            scratch_shapes=[pltpu.VMEM((2, LANE), jnp.float32),       # h1 sum / sumsq
                            pltpu.VMEM((2, LANE), jnp.float32)],      # h2 sum / sumsq
        ),
        compiler_params=pltpu.CompilerParams(
            dimension_semantics=("arbitrary", "arbitrary"),
            vmem_limit_bytes=32 * 1024 * 1024,
        ),
    )(z, w1, w2, w3, bn_packed)

    return out_padded[:n, :DATA_DIM]


def init_params(key):
    """Deterministic synthetic parameters matching PyTorch Linear/BatchNorm shapes."""
    ks = jax.random.split(key, 6)

    def linear(kw, kb, fan_in, fan_out):
        bound = 1.0 / jnp.sqrt(jnp.float32(fan_in))
        # stored as [in, out] so the kernel computes x @ W + b
        w = jax.random.uniform(kw, (fan_in, fan_out), jnp.float32, -bound, bound)
        b = jax.random.uniform(kb, (1, fan_out), jnp.float32, -bound, bound)
        return w, b

    w1, b1 = linear(ks[0], ks[1], Z_DIM, H1)
    w2, b2 = linear(ks[2], ks[3], H1, H2)
    w3, b3 = linear(ks[4], ks[5], H2, DATA_DIM)

    return {
        "w1": w1, "b1": b1,
        "g1": jnp.ones((1, H1), jnp.float32), "be1": jnp.zeros((1, H1), jnp.float32),
        "w2": w2, "b2": b2,
        "g2": jnp.ones((1, H2), jnp.float32), "be2": jnp.zeros((1, H2), jnp.float32),
        "w3": w3, "b3": b3,
    }


def generator_ref(noise, params):
    """Pure-JAX f32 reference matching the PyTorch module (biases included)."""
    def bn_relu(h, g, b):
        mu = jnp.mean(h, axis=0, keepdims=True)
        var = jnp.mean((h - mu) ** 2, axis=0, keepdims=True)
        return jnp.maximum((h - mu) / jnp.sqrt(var + BN_EPS) * g + b, 0.0)

    h1 = bn_relu(noise @ params["w1"] + params["b1"], params["g1"], params["be1"])
    h2 = bn_relu(h1 @ params["w2"] + params["b2"], params["g2"], params["be2"])
    return jax.nn.sigmoid(h2 @ params["w3"] + params["b3"])


if __name__ == "__main__":
    key = jax.random.PRNGKey(0)
    k_noise, k_params = jax.random.split(key)
    params = init_params(k_params)

    # Multi-tile batch (2 tiles of 8 rows) exercises the cross-tile BN reduction.
    batch = 16
    noise = jax.random.normal(k_noise, (batch, Z_DIM), jnp.float32)

    out = jax.block_until_ready(generator_forward(noise, params, block_m=8))
    ref = generator_ref(noise, params)
    assert out.shape == (batch, DATA_DIM)
    assert jnp.allclose(out, ref, atol=2e-2, rtol=2e-2), "mismatch vs reference"

    # Ragged batch (13 rows, block of 8) exercises the partial-tile mask path.
    noise2 = noise[:13]
    out2 = jax.block_until_ready(generator_forward(noise2, params, block_m=8))
    ref2 = generator_ref(noise2, params)
    assert out2.shape == (13, DATA_DIM)
    assert jnp.allclose(out2, ref2, atol=2e-2, rtol=2e-2), "mismatch vs reference (ragged)"

    print("KERNEL_OK")
</pallas_src>

<mosaic_0001>
module attributes {stable_mosaic.version = 11 : i64} {
  func.func @generator_kernel(%arg0: i32, %arg1: i32, %arg2: memref<8x128xbf16, #tpu.memory_space<vmem>>, %arg3: memref<128x128xbf16, #tpu.memory_space<vmem>>, %arg4: memref<128x128xbf16, #tpu.memory_space<vmem>>, %arg5: memref<128x128xbf16, #tpu.memory_space<vmem>>, %arg6: memref<8x128xf32, #tpu.memory_space<vmem>>, %arg7: memref<8x128xf32, #tpu.memory_space<vmem>>, %arg8: memref<2x128xf32, #tpu.memory_space<vmem>>, %arg9: memref<2x128xf32, #tpu.memory_space<vmem>>) attributes {dimension_semantics = [#tpu.dimension_semantics<arbitrary>, #tpu.dimension_semantics<arbitrary>], iteration_bounds = array<i64: 3, 2>, scalar_prefetch = 0 : i64, scratch_operands = 2 : i64, tpu.core_type = #tpu.core_type<tc>, window_params = [{transform_indices = @transform_0, window_bounds = array<i64: 8, 128>}, {pipeline_mode = #tpu.pipeline_mode<synchronous>, transform_indices = @transform_1, window_bounds = array<i64: 128, 128>}, {pipeline_mode = #tpu.pipeline_mode<synchronous>, transform_indices = @transform_2, window_bounds = array<i64: 128, 128>}, {pipeline_mode = #tpu.pipeline_mode<synchronous>, transform_indices = @transform_3, window_bounds = array<i64: 128, 128>}, {pipeline_mode = #tpu.pipeline_mode<synchronous>, transform_indices = @transform_4, window_bounds = array<i64: 8, 128>}, {transform_indices = @transform_5, window_bounds = array<i64: 8, 128>}]} {
    %c0 = arith.constant 0 : index
    %c0_0 = arith.constant 0 : index
    %0 = vector.load %arg6[%c0, %c0_0] : memref<8x128xf32, #tpu.memory_space<vmem>>, vector<1x128xf32>
    %c1 = arith.constant 1 : index
    %c0_1 = arith.constant 0 : index
    %1 = vector.load %arg6[%c1, %c0_1] : memref<8x128xf32, #tpu.memory_space<vmem>>, vector<1x128xf32>
    %c2 = arith.constant 2 : index
    %c0_2 = arith.constant 0 : index
    %2 = vector.load %arg6[%c2, %c0_2] : memref<8x128xf32, #tpu.memory_space<vmem>>, vector<1x128xf32>
    %c3 = arith.constant 3 : index
    %c0_3 = arith.constant 0 : index
    %3 = vector.load %arg6[%c3, %c0_3] : memref<8x128xf32, #tpu.memory_space<vmem>>, vector<1x128xf32>
    %c4 = arith.constant 4 : index
    %c0_4 = arith.constant 0 : index
    %4 = vector.load %arg6[%c4, %c0_4] : memref<8x128xf32, #tpu.memory_space<vmem>>, vector<1x128xf32>
    %c2_i32 = arith.constant 2 : i32
    %5 = arith.cmpi slt, %arg0, %c2_i32 : i32
    %6 = arith.extui %5 : i1 to i32
    %c0_i32 = arith.constant 0 : i32
    %7 = arith.cmpi ne, %6, %c0_i32 : i32
    scf.if %7 {
      %cst = arith.constant 0.000000e+00 : f32
      %17 = vector.broadcast %cst : f32 to vector<8x128xf32>
      %c0_10 = arith.constant 0 : index
      %c0_11 = arith.constant 0 : index
      %18 = vector.load %arg7[%c0_10, %c0_11] : memref<8x128xf32, #tpu.memory_space<vmem>>, vector<8x128xf32>
      tpu.vector_store %arg7[%c0_10, %c0_11], %17 {strides = array<i32>} : memref<8x128xf32, #tpu.memory_space<vmem>>, vector<8x128xf32>,
    } else {
    }
    %c0_i32_5 = arith.constant 0 : i32
    %8 = arith.cmpi eq, %arg0, %c0_i32_5 : i32
    %9 = arith.extui %8 : i1 to i32
    %c0_i32_6 = arith.constant 0 : i32
    %10 = arith.cmpi ne, %9, %c0_i32_6 : i32
    scf.if %10 {
      %c0_10 = arith.constant 0 : index
      %c0_11 = arith.constant 0 : index
      %17 = vector.load %arg2[%c0_10, %c0_11] : memref<8x128xbf16, #tpu.memory_space<vmem>>, vector<8x128xbf16>
      %c0_12 = arith.constant 0 : index
      %c0_13 = arith.constant 0 : index
      %18 = vector.load %arg3[%c0_12, %c0_13] : memref<128x128xbf16, #tpu.memory_space<vmem>>, vector<128x128xbf16>
      %cst = arith.constant dense<0.000000e+00> : vector<8x128xf32>
      %19 = tpu.matmul %17, %18, %cst {dimension_numbers = #tpu.dot_dimension_numbers<[1], [0], [0], [1], [0, 0, 1, 1], [], []>} : vector<8x128xbf16>, vector<128x128xbf16>, vector<8x128xf32> -> vector<8x128xf32>
      %cst_14 = arith.constant dense<0.000000e+00> : vector<128xf32>
      %20 = vector.multi_reduction <add>, %19, %cst_14 [0] : vector<8x128xf32> to vector<128xf32>
      %21 = vector.shape_cast %20 : vector<128xf32> to vector<1x128xf32>
      %22 = arith.mulf %19, %19 : vector<8x128xf32>
      %cst_15 = arith.constant dense<0.000000e+00> : vector<128xf32>
      %23 = vector.multi_reduction <add>, %22, %cst_15 [0] : vector<8x128xf32> to vector<128xf32>
      %24 = vector.shape_cast %23 : vector<128xf32> to vector<1x128xf32>
      %25 = tpu.concatenate %21, %24 in 0 : vector<1x128xf32>, vector<1x128xf32> -> vector<2x128xf32>
      %c0_i32_16 = arith.constant 0 : i32
      %26 = arith.cmpi eq, %arg1, %c0_i32_16 : i32
      %27 = arith.extui %26 : i1 to i32
      %c0_i32_17 = arith.constant 0 : i32
      %28 = arith.cmpi ne, %27, %c0_i32_17 : i32
      scf.if %28 {
        %cst_22 = arith.constant 0.000000e+00 : f32
        %32 = vector.broadcast %cst_22 : f32 to vector<2x128xf32>
        %c0_23 = arith.constant 0 : index
        %c0_24 = arith.constant 0 : index
        %33 = vector.load %arg8[%c0_23, %c0_24] : memref<2x128xf32, #tpu.memory_space<vmem>>, vector<2x128xf32>
        tpu.vector_store %arg8[%c0_23, %c0_24], %32 {strides = array<i32>} : memref<2x128xf32, #tpu.memory_space<vmem>>, vector<2x128xf32>,
      } else {
      }
      %c0_18 = arith.constant 0 : index
      %c0_19 = arith.constant 0 : index
      %29 = vector.load %arg8[%c0_18, %c0_19] : memref<2x128xf32, #tpu.memory_space<vmem>>, vector<2x128xf32>
      %30 = arith.addf %29, %25 : vector<2x128xf32>
      %c0_20 = arith.constant 0 : index
      %c0_21 = arith.constant 0 : index
      %31 = vector.load %arg8[%c0_20, %c0_21] : memref<2x128xf32, #tpu.memory_space<vmem>>, vector<2x128xf32>
      tpu.vector_store %arg8[%c0_20, %c0_21], %30 {strides = array<i32>} : memref<2x128xf32, #tpu.memory_space<vmem>>, vector<2x128xf32>,
    } else {
    }
    %c1_i32 = arith.constant 1 : i32
    %11 = arith.cmpi eq, %arg0, %c1_i32 : i32
    %12 = arith.extui %11 : i1 to i32
    %c0_i32_7 = arith.constant 0 : i32
    %13 = arith.cmpi ne, %12, %c0_i32_7 : i32
    scf.if %13 {
      %c0_10 = arith.constant 0 : index
      %c0_11 = arith.constant 0 : index
      %17 = vector.load %arg2[%c0_10, %c0_11] : memref<8x128xbf16, #tpu.memory_space<vmem>>, vector<8x128xbf16>
      %c0_12 = arith.constant 0 : index
      %c0_13 = arith.constant 0 : index
      %18 = vector.load %arg3[%c0_12, %c0_13] : memref<128x128xbf16, #tpu.memory_space<vmem>>, vector<128x128xbf16>
      %cst = arith.constant dense<0.000000e+00> : vector<8x128xf32>
      %19 = tpu.matmul %17, %18, %cst {dimension_numbers = #tpu.dot_dimension_numbers<[1], [0], [0], [1], [0, 0, 1, 1], [], []>} : vector<8x128xbf16>, vector<128x128xbf16>, vector<8x128xf32> -> vector<8x128xf32>
      %c0_14 = arith.constant 0 : index
      %c0_15 = arith.constant 0 : index
      %20 = vector.load %arg8[%c0_14, %c0_15] : memref<2x128xf32, #tpu.memory_space<vmem>>, vector<1x128xf32>
      %cst_16 = arith.constant 6.250000e-02 : f32
      %21 = vector.broadcast %cst_16 : f32 to vector<1x128xf32>
      %22 = arith.mulf %20, %21 : vector<1x128xf32>
      %c1_17 = arith.constant 1 : index
      %c0_18 = arith.constant 0 : index
      %23 = vector.load %arg8[%c1_17, %c0_18] : memref<2x128xf32, #tpu.memory_space<vmem>>, vector<1x128xf32>
      %cst_19 = arith.constant 6.250000e-02 : f32
      %24 = vector.broadcast %cst_19 : f32 to vector<1x128xf32>
      %25 = arith.mulf %23, %24 : vector<1x128xf32>
      %26 = arith.mulf %22, %22 : vector<1x128xf32>
      %27 = arith.subf %25, %26 : vector<1x128xf32>
      %28 = vector.broadcast %22 : vector<1x128xf32> to vector<8x128xf32>
      %29 = arith.subf %19, %28 : vector<8x128xf32>
      %cst_20 = arith.constant 9.99999974E-6 : f32
      %30 = vector.broadcast %cst_20 : f32 to vector<1x128xf32>
      %31 = arith.addf %27, %30 : vector<1x128xf32>
      %32 = math.rsqrt %31 : vector<1x128xf32>
      %33 = vector.broadcast %32 : vector<1x128xf32> to vector<8x128xf32>
      %34 = arith.mulf %29, %33 : vector<8x128xf32>
      %35 = vector.broadcast %0 : vector<1x128xf32> to vector<8x128xf32>
      %36 = arith.mulf %34, %35 : vector<8x128xf32>
      %37 = vector.broadcast %1 : vector<1x128xf32> to vector<8x128xf32>
      %38 = arith.addf %36, %37 : vector<8x128xf32>
      %cst_21 = arith.constant 0.000000e+00 : f32
      %39 = vector.broadcast %cst_21 : f32 to vector<8x128xf32>
      %40 = arith.maximumf %38, %39 : vector<8x128xf32>
      %41 = arith.truncf %40 : vector<8x128xf32> to vector<8x128xbf16>
      %c0_22 = arith.constant 0 : index
      %c0_23 = arith.constant 0 : index
      %42 = vector.load %arg4[%c0_22, %c0_23] : memref<128x128xbf16, #tpu.memory_space<vmem>>, vector<128x128xbf16>
      %cst_24 = arith.constant dense<0.000000e+00> : vector<8x128xf32>
      %43 = tpu.matmul %41, %42, %cst_24 {dimension_numbers = #tpu.dot_dimension_numbers<[1], [0], [0], [1], [0, 0, 1, 1], [], []>} : vector<8x128xbf16>, vector<128x128xbf16>, vector<8x128xf32> -> vector<8x128xf32>
      %cst_25 = arith.constant dense<0.000000e+00> : vector<128xf32>
      %44 = vector.multi_reduction <add>, %43, %cst_25 [0] : vector<8x128xf32> to vector<128xf32>
      %45 = vector.shape_cast %44 : vector<128xf32> to vector<1x128xf32>
      %46 = arith.mulf %43, %43 : vector<8x128xf32>
      %cst_26 = arith.constant dense<0.000000e+00> : vector<128xf32>
      %47 = vector.multi_reduction <add>, %46, %cst_26 [0] : vector<8x128xf32> to vector<128xf32>
      %48 = vector.shape_cast %47 : vector<128xf32> to vector<1x128xf32>
      %49 = tpu.concatenate %45, %48 in 0 : vector<1x128xf32>, vector<1x128xf32> -> vector<2x128xf32>
      %c0_i32_27 = arith.constant 0 : i32
      %50 = arith.cmpi eq, %arg1, %c0_i32_27 : i32
      %51 = arith.extui %50 : i1 to i32
      %c0_i32_28 = arith.constant 0 : i32
      %52 = arith.cmpi ne, %51, %c0_i32_28 : i32
      scf.if %52 {
        %cst_33 = arith.constant 0.000000e+00 : f32
        %56 = vector.broadcast %cst_33 : f32 to vector<2x128xf32>
        %c0_34 = arith.constant 0 : index
        %c0_35 = arith.constant 0 : index
        %57 = vector.load %arg9[%c0_34, %c0_35] : memref<2x128xf32, #tpu.memory_space<vmem>>, vector<2x128xf32>
        tpu.vector_store %arg9[%c0_34, %c0_35], %56 {strides = array<i32>} : memref<2x128xf32, #tpu.memory_space<vmem>>, vector<2x128xf32>,
      } else {
      }
      %c0_29 = arith.constant 0 : index
      %c0_30 = arith.constant 0 : index
      %53 = vector.load %arg9[%c0_29, %c0_30] : memref<2x128xf32, #tpu.memory_space<vmem>>, vector<2x128xf32>
      %54 = arith.addf %53, %49 : vector<2x128xf32>
      %c0_31 = arith.constant 0 : index
      %c0_32 = arith.constant 0 : index
      %55 = vector.load %arg9[%c0_31, %c0_32] : memref<2x128xf32, #tpu.memory_space<vmem>>, vector<2x128xf32>
      tpu.vector_store %arg9[%c0_31, %c0_32], %54 {strides = array<i32>} : memref<2x128xf32, #tpu.memory_space<vmem>>, vector<2x128xf32>,
    } else {
    }
    %c2_i32_8 = arith.constant 2 : i32
    %14 = arith.cmpi eq, %arg0, %c2_i32_8 : i32
    %15 = arith.extui %14 : i1 to i32
    %c0_i32_9 = arith.constant 0 : i32
    %16 = arith.cmpi ne, %15, %c0_i32_9 : i32
    scf.if %16 {
      %c0_10 = arith.constant 0 : index
      %c0_11 = arith.constant 0 : index
      %17 = vector.load %arg2[%c0_10, %c0_11] : memref<8x128xbf16, #tpu.memory_space<vmem>>, vector<8x128xbf16>
      %c0_12 = arith.constant 0 : index
      %c0_13 = arith.constant 0 : index
      %18 = vector.load %arg3[%c0_12, %c0_13] : memref<128x128xbf16, #tpu.memory_space<vmem>>, vector<128x128xbf16>
      %cst = arith.constant dense<0.000000e+00> : vector<8x128xf32>
      %19 = tpu.matmul %17, %18, %cst {dimension_numbers = #tpu.dot_dimension_numbers<[1], [0], [0], [1], [0, 0, 1, 1], [], []>} : vector<8x128xbf16>, vector<128x128xbf16>, vector<8x128xf32> -> vector<8x128xf32>
      %c0_14 = arith.constant 0 : index
      %c0_15 = arith.constant 0 : index
      %20 = vector.load %arg8[%c0_14, %c0_15] : memref<2x128xf32, #tpu.memory_space<vmem>>, vector<1x128xf32>
      %cst_16 = arith.constant 6.250000e-02 : f32
      %21 = vector.broadcast %cst_16 : f32 to vector<1x128xf32>
      %22 = arith.mulf %20, %21 : vector<1x128xf32>
      %c1_17 = arith.constant 1 : index
      %c0_18 = arith.constant 0 : index
      %23 = vector.load %arg8[%c1_17, %c0_18] : memref<2x128xf32, #tpu.memory_space<vmem>>, vector<1x128xf32>
      %cst_19 = arith.constant 6.250000e-02 : f32
      %24 = vector.broadcast %cst_19 : f32 to vector<1x128xf32>
      %25 = arith.mulf %23, %24 : vector<1x128xf32>
      %26 = arith.mulf %22, %22 : vector<1x128xf32>
      %27 = arith.subf %25, %26 : vector<1x128xf32>
      %28 = vector.broadcast %22 : vector<1x128xf32> to vector<8x128xf32>
      %29 = arith.subf %19, %28 : vector<8x128xf32>
      %cst_20 = arith.constant 9.99999974E-6 : f32
      %30 = vector.broadcast %cst_20 : f32 to vector<1x128xf32>
      %31 = arith.addf %27, %30 : vector<1x128xf32>
      %32 = math.rsqrt %31 : vector<1x128xf32>
      %33 = vector.broadcast %32 : vector<1x128xf32> to vector<8x128xf32>
      %34 = arith.mulf %29, %33 : vector<8x128xf32>
      %35 = vector.broadcast %0 : vector<1x128xf32> to vector<8x128xf32>
      %36 = arith.mulf %34, %35 : vector<8x128xf32>
      %37 = vector.broadcast %1 : vector<1x128xf32> to vector<8x128xf32>
      %38 = arith.addf %36, %37 : vector<8x128xf32>
      %cst_21 = arith.constant 0.000000e+00 : f32
      %39 = vector.broadcast %cst_21 : f32 to vector<8x128xf32>
      %40 = arith.maximumf %38, %39 : vector<8x128xf32>
      %41 = arith.truncf %40 : vector<8x128xf32> to vector<8x128xbf16>
      %c0_22 = arith.constant 0 : index
      %c0_23 = arith.constant 0 : index
      %42 = vector.load %arg4[%c0_22, %c0_23] : memref<128x128xbf16, #tpu.memory_space<vmem>>, vector<128x128xbf16>
      %cst_24 = arith.constant dense<0.000000e+00> : vector<8x128xf32>
      %43 = tpu.matmul %41, %42, %cst_24 {dimension_numbers = #tpu.dot_dimension_numbers<[1], [0], [0], [1], [0, 0, 1, 1], [], []>} : vector<8x128xbf16>, vector<128x128xbf16>, vector<8x128xf32> -> vector<8x128xf32>
      %c0_25 = arith.constant 0 : index
      %c0_26 = arith.constant 0 : index
      %44 = vector.load %arg9[%c0_25, %c0_26] : memref<2x128xf32, #tpu.memory_space<vmem>>, vector<1x128xf32>
      %cst_27 = arith.constant 6.250000e-02 : f32
      %45 = vector.broadcast %cst_27 : f32 to vector<1x128xf32>
      %46 = arith.mulf %44, %45 : vector<1x128xf32>
      %c1_28 = arith.constant 1 : index
      %c0_29 = arith.constant 0 : index
      %47 = vector.load %arg9[%c1_28, %c0_29] : memref<2x128xf32, #tpu.memory_space<vmem>>, vector<1x128xf32>
      %cst_30 = arith.constant 6.250000e-02 : f32
      %48 = vector.broadcast %cst_30 : f32 to vector<1x128xf32>
      %49 = arith.mulf %47, %48 : vector<1x128xf32>
      %50 = arith.mulf %46, %46 : vector<1x128xf32>
      %51 = arith.subf %49, %50 : vector<1x128xf32>
      %52 = vector.broadcast %46 : vector<1x128xf32> to vector<8x128xf32>
      %53 = arith.subf %43, %52 : vector<8x128xf32>
      %cst_31 = arith.constant 9.99999974E-6 : f32
      %54 = vector.broadcast %cst_31 : f32 to vector<1x128xf32>
      %55 = arith.addf %51, %54 : vector<1x128xf32>
      %56 = math.rsqrt %55 : vector<1x128xf32>
      %57 = vector.broadcast %56 : vector<1x128xf32> to vector<8x128xf32>
      %58 = arith.mulf %53, %57 : vector<8x128xf32>
      %59 = vector.broadcast %2 : vector<1x128xf32> to vector<8x128xf32>
      %60 = arith.mulf %58, %59 : vector<8x128xf32>
      %61 = vector.broadcast %3 : vector<1x128xf32> to vector<8x128xf32>
      %62 = arith.addf %60, %61 : vector<8x128xf32>
      %cst_32 = arith.constant 0.000000e+00 : f32
      %63 = vector.broadcast %cst_32 : f32 to vector<8x128xf32>
      %64 = arith.maximumf %62, %63 : vector<8x128xf32>
      %65 = arith.truncf %64 : vector<8x128xf32> to vector<8x128xbf16>
      %c0_33 = arith.constant 0 : index
      %c0_34 = arith.constant 0 : index
      %66 = vector.load %arg5[%c0_33, %c0_34] : memref<128x128xbf16, #tpu.memory_space<vmem>>, vector<128x128xbf16>
      %cst_35 = arith.constant dense<0.000000e+00> : vector<8x128xf32>
      %67 = tpu.matmul %65, %66, %cst_35 {dimension_numbers = #tpu.dot_dimension_numbers<[1], [0], [0], [1], [0, 0, 1, 1], [], []>} : vector<8x128xbf16>, vector<128x128xbf16>, vector<8x128xf32> -> vector<8x128xf32>
      %68 = vector.broadcast %4 : vector<1x128xf32> to vector<8x128xf32>
      %69 = arith.addf %67, %68 : vector<8x128xf32>
      %70 = arith.negf %69 : vector<8x128xf32>
      %71 = math.exp %70 : vector<8x128xf32>
      %cst_36 = arith.constant 1.000000e+00 : f32
      %72 = vector.broadcast %cst_36 : f32 to vector<8x128xf32>
      %73 = arith.addf %72, %71 : vector<8x128xf32>
      %74 = arith.divf %72, %73 : vector<8x128xf32>
      %c0_37 = arith.constant 0 : index
      %c0_38 = arith.constant 0 : index
      %75 = vector.load %arg7[%c0_37, %c0_38] : memref<8x128xf32, #tpu.memory_space<vmem>>, vector<8x128xf32>
      tpu.vector_store %arg7[%c0_37, %c0_38], %74 {strides = array<i32>} : memref<8x128xf32, #tpu.memory_space<vmem>>, vector<8x128xf32>,
    } else {
    }
    return
  }
  func.func @transform_0(%arg0: i32, %arg1: i32) -> (i32, i32) {
    %c0_i32 = arith.constant 0 : i32
    %c0_i32_0 = arith.constant 0 : i32
    return %arg1, %c0_i32 : i32, i32
  }
  func.func @transform_1(%arg0: i32, %arg1: i32) -> (i32, i32) {
    %c0_i32 = arith.constant 0 : i32
    %c0_i32_0 = arith.constant 0 : i32
    %c0_i32_1 = arith.constant 0 : i32
    return %c0_i32, %c0_i32_0 : i32, i32
  }
  func.func @transform_2(%arg0: i32, %arg1: i32) -> (i32, i32) {
    %c0_i32 = arith.constant 0 : i32
    %c0_i32_0 = arith.constant 0 : i32
    %c0_i32_1 = arith.constant 0 : i32
    return %c0_i32, %c0_i32_0 : i32, i32
  }
  func.func @transform_3(%arg0: i32, %arg1: i32) -> (i32, i32) {
    %c0_i32 = arith.constant 0 : i32
    %c0_i32_0 = arith.constant 0 : i32
    %c0_i32_1 = arith.constant 0 : i32
    return %c0_i32, %c0_i32_0 : i32, i32
  }
  func.func @transform_4(%arg0: i32, %arg1: i32) -> (i32, i32) {
    %c0_i32 = arith.constant 0 : i32
    %c0_i32_0 = arith.constant 0 : i32
    %c0_i32_1 = arith.constant 0 : i32
    return %c0_i32, %c0_i32_0 : i32, i32
  }
  func.func @transform_5(%arg0: i32, %arg1: i32) -> (i32, i32) {
    %c0_i32 = arith.constant 0 : i32
    %c0_i32_0 = arith.constant 0 : i32
    return %arg1, %c0_i32 : i32, i32
  }
}

</mosaic_0001>

<bundles_post_ra>
// kernel: tpu_custom_call.1
= control target key start
LH: loop header
LB: loop body
LE: loop exit
PB: predicated region body
PF: predicated region fallthrough
CT: control target
= control target key end

     0   :  { %s2287_s0 = inlined_call_operand.hbm [shape: bf16[16,128], index: 0, kind: input, shape index: {}]   ;;  %s2288_s1 = inlined_call_operand.hbm [shape: bf16[128,128], index: 1, kind: input, shape index: {}]   ;;  %s2289_s2 = inlined_call_operand.hbm [shape: bf16[128,128], index: 2, kind: input, shape index: {}]   ;;  %s2290_s3 = inlined_call_operand.hbm [shape: bf16[128,128], index: 3, kind: input, shape index: {}]   ;;  %s2291_s4 = inlined_call_operand.vmem [shape: f32[8,128], index: 4, kind: input, shape index: {}]   ;;  %s2292_s5 = inlined_call_operand.hbm [shape: f32[16,128], index: 5, kind: output, shape index: {}]  }
   0x1   :  { %2300 = sst [smem:[#allocation20_spill]] %s2292_s5 }
   0x2   :  { %10 = vsyncpa [#allocation5], 0 }
   0x3   :  { %12 = vsyncpa [#allocation5 + $0x1], 0 }
   0x4   :  { %13 = vsyncpa [#allocation8], 0 }
   0x5   :  { %14 = vsyncpa [#allocation11], 0 }
   0x6   :  { %15 = vsyncpa [#allocation6], 0 }
   0x7   :  { %17 = vsyncpa [#allocation6 + $0x1], 0  ;;  %s1914_s18 = smov 0   ;;  %s1916_s19 = smov 0  }
   0x8   :  { %s1918_s20 = smov 0   ;;  %s1920_s21 = smov 0  }
   0x9   :  { %s1922_s22 = smov 0   ;;  %s1924_s23 = smov 0  }
   0xa   :  { %s1926_s24 = smov 0   ;;  %s1928_s25 = smov 0  }
   0xb LB: > { %2301 = sst [smem:[#allocation17_spill]] %s1838_s18  ;;  %s1217_s26 = sadd.s32 4294967295, %s1866_s25   ;;  %s1866_s25 = sphi %s1928_s25, %s23_s25   ;;  %s1862_s24 = sphi %s1926_s24, %s2330_s24   ;;  %s1858_s23 = sphi %s1924_s23, %s2329_s23   ;;  %s1854_s22 = sphi %s1922_s22, %s2328_s22   ;;  %s1850_s21 = sphi %s1920_s21, %s2327_s21   ;;  %s1846_s20 = sphi %s1918_s20, %s2326_s20   ;;  %s1842_s19 = sphi %s1916_s19, %s2325_s19   ;;  %s1838_s18 = sphi %s1914_s18, %s2324_s18  }
   0xc   : > { %2302 = sst [smem:[#allocation18_spill]] %s1850_s21  ;;  %s1218_s27 = sadd.s32 4294967294, %s1866_s25  }
   0xd   : > { %p55_p0 = scmp.ne.s32.totalorder %s1842_s19, %s1838_s18  ;;  %p1958_p1 = scmp.eq.s32.totalorder %s1217_s26, 0 }
   0xe   : > { %p1962_p2 = scmp.eq.s32.totalorder %s1217_s26, 5  ;;  %p169_p3 = scmp.eq.s32.totalorder %s1218_s27, 5 }
   0xf   : > { %s2303_s28 = scalar_select %p1958_p1, 1, 0 }
  0x10   : > { %s2304_s29 = scalar_select %p1962_p2, 1, 0 }
  0x11   : > { %p1968_p4 = por %p1958_p1, %p55_p0  ;;  %p1219_p5 = scmp.ge.s32.totalorder %s1866_s25, 1 }
  0x12   : > { %p1973_p6 = por %p169_p3, %p55_p0  ;;  %p176_p7 = scmp.lt.s32.totalorder %s1866_s25, 7 }
  0x13   : > { %s2305_s30 = scalar_select %p1968_p4, 1, 0 }
  0x14   : > { %s2306_s6 = scalar_select %p1973_p6, 1, 0 }
  0x15   : > { %p1978_p8 = pnand %p1219_p5, %p176_p7  ;;  %s1868_s8 = smov [#allocation7]  }
  0x16   : > { %2307 = sst [smem:[#allocation19_spill]] %s2306_s6  ;;  %s188_s9 = sshll.u32 %s1868_s8, 4  ;;  %s1982_s9 = int_to_ptr.vmem [resolvable:$true] %s188_s9 }
  0x17   : > { %s2308_s7 = scalar_select %p1978_p8, 1, 0 }
  0x18   : > { %p1484_p9 = pneg %p1978_p8  ;;  %s1869_s11 = smov [#allocation9]  }
  0x19   : > { %s201_s12 = sshll.u32 %s1869_s11, 4  ;;  %s1870_s13 = smov [#allocation10]   ;;  %s1992_s12 = int_to_ptr.vmem [resolvable:$true] %s201_s12 }
  0x1a   : > { %p1988_p10 = pnand %p1484_p9, %p1958_p1  ;;  %s1994_s14 = sshll.u32 %s1870_s13, 4  ;;  %s215_s14 = int_to_ptr.vmem [resolvable:$true] %s1994_s14 }
  0x1b   : > { %s1646_s17 = scalar_lea.hbm %s2288_s1, 1024 }
  0x1c   : > { %p1647_p11 = scmp.ne.s32.totalorder %s2288_s1, %s1646_s17  ;;  %p2004_p12 = pneg %p1988_p10 }
  0x1d   : > { %p1653_p3 = scmp.lt.u32.totalorder %s1646_s17, %s2288_s1 }
  0x1e   : > { %p1649_p13 = pnand %p2004_p12, %p1647_p11 }
  0x20   : > { %p1650_p0 = pneg %p1649_p13 }
  0x22   : > { %p1655_p5 = pnand %p1653_p3, %p1650_p0 }
  0x24   : > { %1658 = shalt.err (!%p1655_p5)
}
  0x25   : > { %s1659_s15 = scalar_lea.vmem %s1982_s9, 1024  ;;  %p1667_p1 = scmp.lt.s32.totalorder %s1982_s9, %s1982_s9 }
  0x26   : > { %p1660_p7 = scmp.ne.s32.totalorder %s1982_s9, %s1659_s15  ;;  %p1668_p4 = scmp.lt.s32.totalorder %s1659_s15, %s1659_s15 }
  0x28   : > { %p1662_p9 = pnand %p1660_p7, %p2004_p12  ;;  %p1669_p11 = por %p1668_p4, %p1667_p1 }
  0x2a   : > { %p1663_p6 = pneg %p1662_p9 }
  0x2c   : > { %p1670_p13 = pnand %p1669_p11, %p1663_p6 }
  0x2e   : > { %1673 = shalt.err (!%p1670_p13)
}
  0x2f   : > { %s1871_s16 = smov 64   ;;  %s1872_s17 = smov 4  }
  0x30   : > { %1487 = dma.hbm_to_vmem [thread:$0]  (!%p1988_p10), %s2288_s1, 1024, %s1982_s9, [#allocation8], %s1871_s16, %s1871_s16, %s1872_s17  }
  0x31   : > { %s1674_s15 = scalar_lea.hbm %s2289_s2, 1024 }
  0x32   : > { %p1675_p1 = scmp.ne.s32.totalorder %s2289_s2, %s1674_s15  ;;  %p1681_p0 = scmp.lt.u32.totalorder %s1674_s15, %s2289_s2 }
  0x34   : > { %p1677_p4 = pnand %p1675_p1, %p2004_p12 }
  0x36   : > { %p1678_p6 = pneg %p1677_p4 }
  0x38   : > { %p1683_p3 = pnand %p1681_p0, %p1678_p6 }
  0x3a   : > { %1686 = shalt.err (!%p1683_p3)
}
  0x3b   : > { %s1687_s9 = scalar_lea.vmem %s1992_s12, 1024  ;;  %p1695_p11 = scmp.lt.s32.totalorder %s1992_s12, %s1992_s12 }
  0x3c   : > { %p1688_p5 = scmp.ne.s32.totalorder %s1992_s12, %s1687_s9  ;;  %p1696_p13 = scmp.lt.s32.totalorder %s1687_s9, %s1687_s9 }
  0x3e   : > { %p1690_p7 = pnand %p1688_p5, %p2004_p12  ;;  %p1697_p1 = por %p1696_p13, %p1695_p11 }
  0x40   : > { %p1691_p9 = pneg %p1690_p7 }
  0x42   : > { %p1698_p4 = pnand %p1697_p1, %p1691_p9 }
  0x44   : > { %1701 = shalt.err (!%p1698_p4)
}
  0x45   : > { %1490 = dma.hbm_to_vmem [thread:$0]  (!%p1988_p10), %s2289_s2, 1024, %s1992_s12, [#allocation8], %s1871_s16, %s1871_s16, %s1872_s17  }
  0x46   : > { %s1702_s26 = scalar_lea.hbm %s2290_s3, 1024 }
  0x47   : > { %p1703_p6 = scmp.ne.s32.totalorder %s2290_s3, %s1702_s26  ;;  %p1709_p5 = scmp.lt.u32.totalorder %s1702_s26, %s2290_s3 }
  0x49   : > { %p1705_p0 = pnand %p1703_p6, %p2004_p12 }
  0x4b   : > { %p1706_p3 = pneg %p1705_p0 }
  0x4d   : > { %p1711_p7 = pnand %p1709_p5, %p1706_p3 }
  0x4f   : > { %1714 = shalt.err (!%p1711_p7)
}
  0x50   : > { %s1715_s9 = scalar_lea.vmem %s215_s14, 1024  ;;  %p1723_p1 = scmp.lt.s32.totalorder %s215_s14, %s215_s14 }
  0x51   : > { %p1716_p9 = scmp.ne.s32.totalorder %s215_s14, %s1715_s9  ;;  %p1724_p4 = scmp.lt.s32.totalorder %s1715_s9, %s1715_s9 }
  0x53   : > { %p1718_p11 = pnand %p1716_p9, %p2004_p12  ;;  %p1725_p8 = por %p1724_p4, %p1723_p1 }
  0x55   : > { %p1719_p13 = pneg %p1718_p11 }
  0x57   : > { %p1726_p2 = pnand %p1725_p8, %p1719_p13 }
  0x59   : > { %1729 = shalt.err (!%p1726_p2)
}
  0x5a   : > { %1493 = dma.hbm_to_vmem [thread:$0]  (!%p1988_p10), %s2290_s3, 1024, %s215_s14, [#allocation11], %s1871_s16, %s1871_s16, %s1872_s17  }
  0x5b   : > { %s32_s8 = sadd.s32 1, %s1858_s23  ;;  %s35_s10 = sadd.s32 1, %s1862_s24 }
  0x5c   : > { %p33_p2 = scmp.ge.s32.totalorder %s32_s8, 2  ;;  %s42_s18 = sadd.s32 1, %s1846_s20 }
  0x5d   : > { %p49_p8 = scmp.ne.s32.totalorder %s1846_s20, %s1842_s19  ;;  %p50_p12 = scmp.eq.s32.totalorder %s1866_s25, 0 }
  0x5e   : > { %s2332_s8 = smov (%p33_p2, %s32_s8), 0  ;;  %s2334_s10 = smov (!%p33_p2, %s35_s10), %s1862_s24 }
  0x5f   : > { %s39_s21 = ssub.s32 %s1858_s23, %s2332_s8  ;;  %p37_p6 = scmp.ge.s32.totalorder %s2334_s10, 3 }
  0x60   : > { %p40_p0 = scmp.eq.s32.totalorder %s39_s21, 0  ;;  %p51_p3 = por %p50_p12, %p49_p8 }
  0x61   : > { %p2311_p5 = scmp.ne.s32.totalorder %s2304_s29, 0  ;;  %s2336_s10 = smov (%p37_p6, %s2334_s10), 0 }
  0x62   : > { %s2096_s16 = scalar_select %p40_p0, %s1846_s20, %s42_s18  }
  0x63   : > { %p2089_p7 = por %p2311_p5, %p49_p8  ;;  %p1505_p10 = scmp.lt.s32.totalorder %s1866_s25, 6 }
  0x64   : > { %s231_s17 = sand.u32 1, %s1846_s20   ;;  %s1225_s26 = sshll.u32 %s1858_s23, 6 }
  0x65   : > { %s1224_s6 = sshll.u32 %s231_s17, 2  ;;  %s2104_s13 = scalar_lea.hbm %s2287_s0, %s1225_s26 }
  0x66   : > { %s235_s29 = scalar_lea.vmem [#allocation4], %s1224_s6  ;;  %p2108_p9 = pnand %p1505_p10, %p51_p3 }
  0x67   : > { %s242_s15 = sshll.u32 %s235_s29, 4  ;;  %s232_s12 = scalar_lea.sflag [#allocation5], %s231_s17  ;;  %s2106_s15 = int_to_ptr.vmem [resolvable:$true] %s242_s15 }
  0x68   : > { %s1730_s5 = scalar_lea.hbm %s2104_s13, 64  ;;  %p1732_p13 = pneg %p2108_p9 }
  0x69   : > { %p1731_p11 = scmp.ne.s32.totalorder %s2104_s13, %s1730_s5  ;;  %s1735_s6 = scalar_lea.hbm %s2287_s0, 128 }
  0x6a   : > { %p1736_p2 = scmp.lt.u32.totalorder %s2104_s13, %s2287_s0  ;;  %p1737_p8 = scmp.lt.u32.totalorder %s1735_s6, %s1730_s5 }
  0x6b   : > { %p1733_p1 = pnand %p1732_p13, %p1731_p11  ;;  %p1739_p6 = scmp.lt.u32.totalorder %s1730_s5, %s2104_s13 }
  0x6c   : > { %p1738_p12 = por %p1737_p8, %p1736_p2 }
  0x6d   : > { %p1734_p4 = pneg %p1733_p1 }
  0x6e   : > { %p1740_p0 = por %p1739_p6, %p1738_p12 }
  0x70   : > { %p1741_p3 = pnand %p1740_p0, %p1734_p4 }
  0x72   : > { %1744 = shalt.err (!%p1741_p3)
}
  0x73   : > { %s1745_s17 = scalar_lea.vmem %s2106_s15, 64  ;;  %s1873_s11 = smov [#allocation4]  }
  0x74   : > { %p1746_p5 = scmp.ne.s32.totalorder %s2106_s15, %s1745_s17  ;;  %s1750_s29 = sshll.u32 %s1873_s11, 4  ;;  %s1751_s29 = int_to_ptr.vmem [resolvable:$false] %s1750_s29 }
  0x75   : > { %s1752_s18 = scalar_lea.vmem %s1751_s29, 128  ;;  %p1753_p1 = scmp.lt.s32.totalorder %s2106_s15, %s1751_s29 }
  0x76   : > { %p1748_p10 = pnand %p1746_p5, %p1732_p13  ;;  %p1754_p2 = scmp.lt.s32.totalorder %s1752_s18, %s1745_s17 }
  0x78   : > { %p1749_p11 = pneg %p1748_p10  ;;  %p1755_p8 = por %p1754_p2, %p1753_p1 }
  0x7a   : > { %p1756_p12 = pnand %p1755_p8, %p1749_p11 }
  0x7c   : > { %1759 = shalt.err (!%p1756_p12)
}
  0x7d   : > { %1497 = dma.hbm_to_vmem [thread:$0]  (!%p2108_p9), %s2104_s13, 64, %s2106_s15, %s232_s12  }
  0x7e   : > { %p2314_p4 = scmp.ne.s32.totalorder %s2308_s7, 0 }
  0x7f   : > { %s2140_s5 = sand.u32 (!%p2314_p4), 1, %s1842_s19   ;;  %p2315_p13 = scmp.ne.s32.totalorder (!%p2314_p4), %s2305_s30, 0 }
  0x80   : > { %251 = sbr.rel (%p2314_p4) target bundleno = 1652 (0x674), region = 40  ;;  %s1227_s21 = sshll.u32 (!%p2314_p4), %s2140_s5, 2 }
  0x81   : > { %s254_s6 = scalar_lea.sflag (!%p2314_p4), [#allocation5], %s2140_s5  ;;  %s2144_s26 = scalar_lea.vmem (!%p2314_p4), [#allocation4], %s1227_s21 }
  0x87   : > { %1821 = dma.done.wait (%p2315_p13), %s254_s6, 64  }
  0x88   : > { %1823 = vsyncadd (%p2315_p13), %s254_s6, 4294967232  ;;  %p2316_p9 = scmp.ne.s32.totalorder %s2303_s28, 0 }
  0x8a   : > { %1825 = dma.done.wait (%p2316_p9), [#allocation8], 2048  }
  0x8b   : > { %1827 = vsyncadd (%p2316_p9), [#allocation8], 4294965248 }
  0x8c   : > { %1829 = dma.done.wait (%p2316_p9), [#allocation11], 1024  }
  0x8d   : > { %1831 = vsyncadd (%p2316_p9), [#allocation11], 4294966272  ;;  %s1231_s7 = sshll.u32 %s2140_s5, 3  ;;  %v2162_v0 = vld [vmem:[%s2291_s4] sm:$0x1]  ;;  %p1232_p6 = scmp.ge.s32.totalorder %s1854_s22, 2 }
  0x8e   : > { %v2167_v1 = vld [vmem:[%s2291_s4 + $0x1] sm:$0x1]  ;;  %v2172_v2 = vld [vmem:[%s2291_s4 + $0x2] ss:$0 sm:$0xff]  ;;  %v2177_v3 = vld [vmem:[%s2291_s4 + $0x3] ss:$0 sm:$0xff] }
  0x8f   : > { %v2182_v4 = vld [vmem:[%s2291_s4 + $0x4] ss:$0 sm:$0xff]  ;;  %s2184_s18 = scalar_lea.vmem [#allocation12], %s1231_s7  ;;  %305 = sbr.rel (%p1232_p6) target bundleno = 150 (0x96), region = 60  ;;  %v1874_v5 = vmov (!%p1232_p6), 0.0  }
  0x90   : > { %306 = vst [vmem:[%s2184_s18] sm:$0xff] (!%p1232_p6), %v1874_v5 }
  0x96 PF: > { %p1233_p0 = scmp.ne.s32.totalorder %s1854_s22, 0 }
  0x97   : > { %v1588_v6 = vld [vmem:[#allocation7] sm:$0xff] (!%p1233_p0)   ;;  %v1875_v7 = vmov (!%p1233_p0), 0.0   ;;  %v1589_v8 = vld [vmem:[#allocation7 + $0x8] sm:$0xff] (!%p1233_p0)   ;;  %vm1876_vm0 = vmmov (!%p1233_p0), 0   ;;  %v1590_v9 = vld [vmem:[#allocation7 + $0x10] sm:$0xff] (!%p1233_p0)   ;;  %vm429_vm1 = vcmask (!%p1233_p0), 1040384  }
  0x98   : > { %310 = sbr.rel (%p1233_p0) target bundleno = 415 (0x19f), region = 64  ;;  %1348 = vmatprep.subr.bf16.mxu0 (!%p1233_p0), %v1875_v7  ;;  %1364 = vmatprep.mubr.msk.bf16.mxu0 (!%p1233_p0), %vm1876_vm0, %v1875_v7  ;;  %v1591_v10 = vld [vmem:[#allocation7 + $0x18] sm:$0xff] (!%p1233_p0)   ;;  %v1592_v11 = vld [vmem:[#allocation7 + $0x20] sm:$0xff] (!%p1233_p0)   ;;  %v1593_v12 = vld [vmem:[#allocation7 + $0x28] sm:$0xff] (!%p1233_p0)   ;;  %s2317_s21 = sld [smem:[#allocation18_spill]] (!%p1233_p0) }
  0x99   : > { %1349 = vmatpush3.bf16.msra.mxu0 (!%p1233_p0), %v1588_v6  ;;  %v1594_v13 = vld [vmem:[#allocation7 + $0x30] sm:$0xff] (!%p1233_p0)   ;;  %v1595_v14 = vld [vmem:[#allocation7 + $0x38] sm:$0xff] (!%p1233_p0)  }
  0x9a   : > { %1350 = vmatprep.subr.bf16.mxu0 (!%p1233_p0), %v1875_v7  ;;  %v311_v15 = vld [vmem:[%s2144_s26] sm:$0xf] (!%p1233_p0) }
  0x9d   : > { %1351 = vmatpush3.bf16.msra.mxu0 (!%p1233_p0), %v1589_v8 }
  0x9e   : > { %1352 = vmatprep.subr.bf16.mxu0 (!%p1233_p0), %v1875_v7  ;;  %p1242_p3 = scmp.ne.s32.totalorder (!%p1233_p0), %s2317_s21, 0 }
  0x9f   : > { %v1877_v34 = vmov (!%p1242_p3), 0.0  }
  0xa0   : > { %435 = vst [vmem:[#allocation2] sm:$0x3] (!%p1242_p3), %v1877_v34 }
  0xa1   : > { %1353 = vmatpush3.bf16.msra.mxu0 %v1590_v9 }
  0xa2   : > { %1354 = vmatprep.subr.bf16.mxu0 %v1875_v7 }
  0xa5   : > { %1355 = vmatpush3.bf16.msra.mxu0 %v1591_v10 }
  0xa6   : > { %1356 = vmatprep.subr.bf16.mxu0 %v1875_v7 }
  0xa9   : > { %1357 = vmatpush3.bf16.msra.mxu0 %v1592_v11 }
  0xaa   : > { %1358 = vmatprep.subr.bf16.mxu0 %v1875_v7 }
  0xad   : > { %1359 = vmatpush3.bf16.msra.mxu0 %v1593_v12 }
  0xae   : > { %1360 = vmatprep.subr.bf16.mxu0 %v1875_v7 }
  0xb1   : > { %1361 = vmatpush3.bf16.msra.mxu0 %v1594_v13 }
  0xb2   : > { %1362 = vmatprep.subr.bf16.mxu0 %v1875_v7 }
  0xb5   : > { %1363 = vmatpush3.bf16.msra.mxu0 %v1595_v14 }
  0xb8   : > { %1365 = vmatmul.mubr.bf16.vlgmr.msra.gmra.mrb[0].mxu0 %v311_v15 }
 0x18b   : > { %v410_v16 = vpop.f32.mrb[0].mxu0 }
 0x18c   : > { %v416_v17 = vrot.slane %v410_v16, 4  ;;  %v422_v18 = vmul.f32 %v410_v16, %v410_v16  ;;  %v1366_v19 = vpop.f32.mrb[1].mxu0 }
 0x18d   : > { %v413_v20 = vpop.f32.mrb[2].mxu0 }
 0x18e   : > { %v417_v21 = vadd.f32 %v416_v17, %v410_v16  ;;  %v423_v22 = vrot.slane %v422_v18, 4  ;;  %v1367_v23 = vpop.f32.mrb[3].mxu0 }
 0x190   : > { %v418_v24 = vrot.slane %v417_v21, 2  ;;  %v424_v25 = vadd.f32 %v423_v22, %v422_v18 }
 0x192   : > { %v419_v26 = vadd.f32 %v418_v24, %v417_v21  ;;  %v425_v27 = vrot.slane %v424_v25, 2 }
 0x194   : > { %v420_v28 = vrot.slane %v419_v26, 1  ;;  %v426_v29 = vadd.f32 %v425_v27, %v424_v25  ;;  %434 = sbr.rel (%p1242_p3) target bundleno = 411 (0x19b), region = 68 }
 0x196   : > { %v427_v30 = vrot.slane %v426_v29, 1  ;;  %v421_v31 = vadd.f32 %v420_v28, %v419_v26 }
 0x198   : > { %v428_v32 = vadd.f32 %v427_v30, %v426_v29 }
 0x19a   : > { %v430_v33 = vsel %vm429_vm1, %v421_v31, %v428_v32 }
 0x19b PF: > { %v436_v35 = vld [vmem:[#allocation2] sm:$0x3] }
 0x19c   : > { %v437_v36 = vadd.f32 %v436_v35, %v430_v33 }
 0x19e   : > { %438 = vst [vmem:[#allocation2] sm:$0x3] %v437_v36 }
 0x19f PF: > { %p1243_p5 = scmp.ne.s32.totalorder %s1854_s22, 1 }
 0x1a0   : > { %v1596_v37 = vld [vmem:[#allocation7] sm:$0xff] (!%p1243_p5)   ;;  %v1878_v38 = vmov (!%p1243_p5), 0.0   ;;  %v1597_v39 = vld [vmem:[#allocation7 + $0x8] sm:$0xff] (!%p1243_p5)   ;;  %vm1879_vm2 = vmmov (!%p1243_p5), 0   ;;  %v1598_v40 = vld [vmem:[#allocation7 + $0x10] sm:$0xff] (!%p1243_p5)   ;;  %v554_v62 = vlaneseq (!%p1243_p5)  ;;  %vm695_vm3 = vcmask (!%p1243_p5), 1040384  }
 0x1a1   : > { %442 = sbr.rel (%p1243_p5) target bundleno = 904 (0x388), region = 72  ;;  %1368 = vmatprep.subr.bf16.mxu0 (!%p1243_p5), %v1878_v38  ;;  %1388 = vmatprep.subr.bf16.mxu1 (!%p1243_p5), %v1878_v38  ;;  %v1604_v41 = vld [vmem:[#allocation9] sm:$0xff] (!%p1243_p5)   ;;  %v1599_v42 = vld [vmem:[#allocation7 + $0x18] sm:$0xff] (!%p1243_p5)   ;;  %v1605_v43 = vld [vmem:[#allocation9 + $0x8] sm:$0xff] (!%p1243_p5)   ;;  %s2318_s6 = sld [smem:[#allocation18_spill]] (!%p1243_p5) }
 0x1a2   : > { %1369 = vmatpush3.bf16.msra.mxu0 (!%p1243_p5), %v1596_v37  ;;  %1384 = vmatprep.mubr.msk.bf16.mxu0 (!%p1243_p5), %vm1879_vm2, %v1878_v38  ;;  %v1600_v44 = vld [vmem:[#allocation7 + $0x20] sm:$0xff] (!%p1243_p5)   ;;  %v1606_v45 = vld [vmem:[#allocation9 + $0x10] sm:$0xff] (!%p1243_p5)   ;;  %v1601_v46 = vld [vmem:[#allocation7 + $0x28] sm:$0xff] (!%p1243_p5)   ;;  %v555_v63 = vshrl.u32 (!%p1243_p5), %v554_v62, 7 }
 0x1a3   : > { %1370 = vmatprep.subr.bf16.mxu0 (!%p1243_p5), %v1878_v38  ;;  %1404 = vmatprep.mubr.msk.bf16.mxu1 (!%p1243_p5), %vm1879_vm2, %v1878_v38  ;;  %v1607_v47 = vld [vmem:[#allocation9 + $0x18] sm:$0xff] (!%p1243_p5)   ;;  %v1602_v48 = vld [vmem:[#allocation7 + $0x30] sm:$0xff] (!%p1243_p5)   ;;  %v1608_v49 = vld [vmem:[#allocation9 + $0x20] sm:$0xff] (!%p1243_p5)  }
 0x1a4   : > { %1389 = vmatpush3.bf16.msra.mxu1 (!%p1243_p5), %v1604_v41  ;;  %v1603_v50 = vld [vmem:[#allocation7 + $0x38] sm:$0xff] (!%p1243_p5)   ;;  %v1609_v52 = vld [vmem:[#allocation9 + $0x28] sm:$0xff] (!%p1243_p5)   ;;  %v1610_v53 = vld [vmem:[#allocation9 + $0x30] sm:$0xff] (!%p1243_p5)   ;;  %v556_v5 = vsub.s32 (!%p1243_p5), 0, %v555_v63 }
 0x1a5   : > { %1390 = vmatprep.subr.bf16.mxu1 (!%p1243_p5), %v1878_v38  ;;  %v443_v51 = vld [vmem:[%s2144_s26] sm:$0xf] (!%p1243_p5)  ;;  %v548_v55 = vld [vmem:[#allocation2] sm:$0x1] (!%p1243_p5)  ;;  %v550_v57 = vld [vmem:[#allocation2 + $0x1] sm:$0x1] (!%p1243_p5) }
 0x1a6   : > { %1371 = vmatpush3.bf16.msra.mxu0 (!%p1243_p5), %v1597_v39  ;;  %v1611_v54 = vld [vmem:[#allocation9 + $0x38] sm:$0xff] (!%p1243_p5)   ;;  %v549_v56 = vmul.f32 (!%p1243_p5), 0.0625, %v548_v55  ;;  %v551_v58 = vmul.f32 (!%p1243_p5), 0.0625, %v550_v57  ;;  %v569_v11 = vrot.slane (!%p1243_p5), %v2162_v0, %v556_v5  ;;  %v574_v16 = vrot.slane (!%p1243_p5), %v2167_v1, %v556_v5 }
 0x1a7   : > { %1372 = vmatprep.subr.bf16.mxu0 (!%p1243_p5), %v1878_v38  ;;  %p1260_p10 = scmp.ne.s32.totalorder (!%p1243_p5), %s2318_s6, 0 }
 0x1a8   : > { %1391 = vmatpush3.bf16.msra.mxu1 %v1605_v43  ;;  %v552_v59 = vmul.f32 %v549_v56, %v549_v56  ;;  %v557_v7 = vrot.slane %v549_v56, %v556_v5  ;;  %v1880_v39 = vmov (!%p1260_p10), 0.0  }
 0x1a9   : > { %1392 = vmatprep.subr.bf16.mxu1 %v1878_v38  ;;  %701 = vst [vmem:[#allocation3] sm:$0x3] (!%p1260_p10), %v1880_v39 }
 0x1aa   : > { %1373 = vmatpush3.bf16.msra.mxu0 %v1598_v40  ;;  %v553_v60 = vsub.f32 %v551_v58, %v552_v59 }
 0x1ab   : > { %1374 = vmatprep.subr.bf16.mxu0 %v1878_v38 }
 0x1ac   : > { %1393 = vmatpush3.bf16.msra.mxu1 %v1606_v45  ;;  %v559_v61 = vadd.f32 1e-05, %v553_v60 }
 0x1ad   : > { %1394 = vmatprep.subr.bf16.mxu1 %v1878_v38 }
 0x1ae   : > { %1375 = vmatpush3.bf16.msra.mxu0 %v1599_v42  ;;  %1612 = vrsqrt.f32 %v559_v61 }
 0x1af   : > { %1376 = vmatprep.subr.bf16.mxu0 %v1878_v38 }
 0x1b0   : > { %1395 = vmatpush3.bf16.msra.mxu1 %v1607_v47 }
 0x1b1   : > { %1396 = vmatprep.subr.bf16.mxu1 %v1878_v38 }
 0x1b2   : > { %1377 = vmatpush3.bf16.msra.mxu0 %v1600_v44 }
 0x1b3   : > { %1378 = vmatprep.subr.bf16.mxu0 %v1878_v38 }
 0x1b4   : > { %1397 = vmatpush3.bf16.msra.mxu1 %v1608_v49 }
 0x1b5   : > { %1398 = vmatprep.subr.bf16.mxu1 %v1878_v38 }
 0x1b6   : > { %1379 = vmatpush3.bf16.msra.mxu0 %v1601_v46 }
 0x1b7   : > { %1380 = vmatprep.subr.bf16.mxu0 %v1878_v38 }
 0x1b8   : > { %1399 = vmatpush3.bf16.msra.mxu1 %v1609_v52  ;;  %v1613_v6 = vpop.eup %1612 }
 0x1b9   : > { %1400 = vmatprep.subr.bf16.mxu1 %v1878_v38  ;;  %v564_v8 = vrot.slane %v1613_v6, %v556_v5 }
 0x1ba   : > { %1381 = vmatpush3.bf16.msra.mxu0 %v1602_v48 }
 0x1bb   : > { %1382 = vmatprep.subr.bf16.mxu0 %v1878_v38 }
 0x1bc   : > { %1401 = vmatpush3.bf16.msra.mxu1 %v1610_v53 }
 0x1bd   : > { %1402 = vmatprep.subr.bf16.mxu1 %v1878_v38 }
 0x1be   : > { %1383 = vmatpush3.bf16.msra.mxu0 %v1603_v50 }
 0x1c0   : > { %1403 = vmatpush3.bf16.msra.mxu1 %v1611_v54 }
 0x1c1   : > { %1385 = vmatmul.mubr.bf16.vlgmr.msra.gmra.mrb[0].mxu0 %v443_v51 }
 0x294   : > { %v542_v9 = vpop.f32.mrb[0].mxu0 }
 0x295   : > { %v558_v10 = vsub.f32 %v542_v9, %v557_v7  ;;  %v1386_v12 = vpop.f32.mrb[1].mxu0 }
 0x296   : > { %v545_v13 = vpop.f32.mrb[2].mxu0 }
 0x297   : > { %v565_v14 = vmul.f32 %v564_v8, %v558_v10  ;;  %v1387_v15 = vpop.f32.mrb[3].mxu0 }
 0x299   : > { %v570_v17 = vmul.f32 %v569_v11, %v565_v14 }
 0x29b   : > { %v575_v18 = vadd.f32 %v574_v16, %v570_v17 }
 0x29d   : > { %v576_v19 = vmax.f32 %v575_v18, 0.0 }
 0x29f   : > { %v577_v20 = vpack.c.bf16 %v576_v19, %v576_v19 }
 0x2a1   : > { %1405 = vmatmul.mubr.bf16.vlgmr.msra.gmra.mrb[0].mxu1 %v577_v20 }
 0x374   : > { %v676_v21 = vpop.f32.mrb[0].mxu1 }
 0x375   : > { %v682_v22 = vrot.slane %v676_v21, 4  ;;  %v688_v23 = vmul.f32 %v676_v21, %v676_v21  ;;  %v1406_v24 = vpop.f32.mrb[1].mxu1 }
 0x376   : > { %v679_v25 = vpop.f32.mrb[2].mxu1 }
 0x377   : > { %v683_v26 = vadd.f32 %v682_v22, %v676_v21  ;;  %v689_v27 = vrot.slane %v688_v23, 4  ;;  %v1407_v28 = vpop.f32.mrb[3].mxu1 }
 0x379   : > { %v684_v29 = vrot.slane %v683_v26, 2  ;;  %v690_v30 = vadd.f32 %v689_v27, %v688_v23 }
 0x37b   : > { %v685_v31 = vadd.f32 %v684_v29, %v683_v26  ;;  %v691_v32 = vrot.slane %v690_v30, 2 }
 0x37d   : > { %v686_v33 = vrot.slane %v685_v31, 1  ;;  %v692_v34 = vadd.f32 %v691_v32, %v690_v30  ;;  %700 = sbr.rel (%p1260_p10) target bundleno = 900 (0x384), region = 76 }
 0x37f   : > { %v693_v35 = vrot.slane %v692_v34, 1  ;;  %v687_v36 = vadd.f32 %v686_v33, %v685_v31 }
 0x381   : > { %v694_v37 = vadd.f32 %v693_v35, %v692_v34 }
 0x383   : > { %v696_v38 = vsel %vm695_vm3, %v687_v36, %v694_v37 }
 0x384 PF: > { %v702_v40 = vld [vmem:[#allocation3] sm:$0x3] }
 0x385   : > { %v703_v41 = vadd.f32 %v702_v40, %v696_v38 }
 0x387   : > { %704 = vst [vmem:[#allocation3] sm:$0x3] %v703_v41 }
 0x388 PF: > { %p1261_p11 = scmp.ne.s32.totalorder %s1854_s22, 2 }
 0x389   : > { %v1614_v42 = vld [vmem:[#allocation7] sm:$0xff] (!%p1261_p11)   ;;  %v1881_v43 = vmov (!%p1261_p11), 0.0   ;;  %v1615_v44 = vld [vmem:[#allocation7 + $0x8] sm:$0xff] (!%p1261_p11)   ;;  %vm1882_vm4 = vmmov (!%p1261_p11), 0   ;;  %v1616_v45 = vld [vmem:[#allocation7 + $0x10] sm:$0xff] (!%p1261_p11)   ;;  %v820_v13 = vlaneseq (!%p1261_p11) }
 0x38a   : > { %708 = sbr.rel (%p1261_p11) target bundleno = 1627 (0x65b), region = 80  ;;  %1408 = vmatprep.subr.bf16.mxu0 (!%p1261_p11), %v1881_v43  ;;  %1428 = vmatprep.subr.bf16.mxu1 (!%p1261_p11), %v1881_v43  ;;  %v1622_v46 = vld [vmem:[#allocation9] sm:$0xff] (!%p1261_p11)   ;;  %v1617_v47 = vld [vmem:[#allocation7 + $0x18] sm:$0xff] (!%p1261_p11)   ;;  %v1623_v48 = vld [vmem:[#allocation9 + $0x8] sm:$0xff] (!%p1261_p11)  }
 0x38b   : > { %1409 = vmatpush3.bf16.msra.mxu0 (!%p1261_p11), %v1614_v42  ;;  %1424 = vmatprep.mubr.msk.bf16.mxu0 (!%p1261_p11), %vm1882_vm4, %v1881_v43  ;;  %v1618_v49 = vld [vmem:[#allocation7 + $0x20] sm:$0xff] (!%p1261_p11)   ;;  %v1624_v50 = vld [vmem:[#allocation9 + $0x10] sm:$0xff] (!%p1261_p11)   ;;  %v1619_v51 = vld [vmem:[#allocation7 + $0x28] sm:$0xff] (!%p1261_p11)   ;;  %v821_v14 = vshrl.u32 (!%p1261_p11), %v820_v13, 7 }
 0x38c   : > { %1410 = vmatprep.subr.bf16.mxu0 (!%p1261_p11), %v1881_v43  ;;  %1444 = vmatprep.mubr.msk.bf16.mxu1 (!%p1261_p11), %vm1882_vm4, %v1881_v43  ;;  %v1625_v52 = vld [vmem:[#allocation9 + $0x18] sm:$0xff] (!%p1261_p11)   ;;  %v1620_v53 = vld [vmem:[#allocation7 + $0x30] sm:$0xff] (!%p1261_p11)   ;;  %v1626_v54 = vld [vmem:[#allocation9 + $0x20] sm:$0xff] (!%p1261_p11)  }
 0x38d   : > { %1429 = vmatpush3.bf16.msra.mxu1 (!%p1261_p11), %v1622_v46  ;;  %v1621_v55 = vld [vmem:[#allocation7 + $0x38] sm:$0xff] (!%p1261_p11)   ;;  %v1627_v57 = vld [vmem:[#allocation9 + $0x28] sm:$0xff] (!%p1261_p11)   ;;  %v1628_v58 = vld [vmem:[#allocation9 + $0x30] sm:$0xff] (!%p1261_p11)   ;;  %v822_v15 = vsub.s32 (!%p1261_p11), 0, %v821_v14 }
 0x38e   : > { %1430 = vmatprep.subr.bf16.mxu1 (!%p1261_p11), %v1881_v43  ;;  %v709_v56 = vld [vmem:[%s2144_s26] sm:$0xf] (!%p1261_p11)  ;;  %v1630_v60 = vld [vmem:[#allocation10] sm:$0xff] (!%p1261_p11)   ;;  %v1631_v61 = vld [vmem:[#allocation10 + $0x8] sm:$0xff] (!%p1261_p11)  }
 0x38f   : > { %1411 = vmatpush3.bf16.msra.mxu0 (!%p1261_p11), %v1615_v44  ;;  %v1629_v59 = vld [vmem:[#allocation9 + $0x38] sm:$0xff] (!%p1261_p11)   ;;  %v1632_v62 = vld [vmem:[#allocation10 + $0x10] sm:$0xff] (!%p1261_p11)   ;;  %v1634_v5 = vld [vmem:[#allocation10 + $0x20] sm:$0xff] (!%p1261_p11)   ;;  %v835_v21 = vrot.slane (!%p1261_p11), %v2162_v0, %v822_v15  ;;  %v840_v26 = vrot.slane (!%p1261_p11), %v2167_v1, %v822_v15 }
 0x390   : > { %1412 = vmatprep.subr.bf16.mxu0 (!%p1261_p11), %v1881_v43  ;;  %v1633_v63 = vld [vmem:[#allocation10 + $0x18] sm:$0xff] (!%p1261_p11)   ;;  %v814_v6 = vld [vmem:[#allocation2] sm:$0x1] (!%p1261_p11)  ;;  %v816_v8 = vld [vmem:[#allocation2 + $0x1] sm:$0x1] (!%p1261_p11) }
 0x391   : > { %1431 = vmatpush3.bf16.msra.mxu1 %v1623_v48  ;;  %v815_v7 = vmul.f32 0.0625, %v814_v6  ;;  %v817_v9 = vmul.f32 0.0625, %v816_v8  ;;  %v1635_v31 = vld [vmem:[#allocation10 + $0x28] sm:$0xff]   ;;  %v1636_v32 = vld [vmem:[#allocation10 + $0x30] sm:$0xff]   ;;  %v1637_v0 = vld [vmem:[#allocation10 + $0x38] sm:$0xff]  }
 0x392   : > { %1432 = vmatprep.subr.bf16.mxu1 %v1881_v43  ;;  %v948_v33 = vld [vmem:[#allocation3] sm:$0x1]  ;;  %v950_v35 = vld [vmem:[#allocation3 + $0x1] sm:$0x1] }
 0x393   : > { %1413 = vmatpush3.bf16.msra.mxu0 %v1616_v45  ;;  %v818_v10 = vmul.f32 %v815_v7, %v815_v7  ;;  %v823_v17 = vrot.slane %v815_v7, %v822_v15  ;;  %v949_v34 = vmul.f32 0.0625, %v948_v33  ;;  %v951_v36 = vmul.f32 0.0625, %v950_v35 }
 0x394   : > { %1414 = vmatprep.subr.bf16.mxu0 %v1881_v43 }
 0x395   : > { %1433 = vmatpush3.bf16.msra.mxu1 %v1624_v50  ;;  %v819_v11 = vsub.f32 %v817_v9, %v818_v10  ;;  %v952_v1 = vmul.f32 %v949_v34, %v949_v34  ;;  %v957_v40 = vrot.slane %v949_v34, %v822_v15 }
 0x396   : > { %1434 = vmatprep.subr.bf16.mxu1 %v1881_v43 }
 0x397   : > { %1415 = vmatpush3.bf16.msra.mxu0 %v1617_v47  ;;  %v825_v12 = vadd.f32 1e-05, %v819_v11  ;;  %v953_v37 = vsub.f32 %v951_v36, %v952_v1 }
 0x398   : > { %1416 = vmatprep.subr.bf16.mxu0 %v1881_v43 }
 0x399   : > { %1435 = vmatpush3.bf16.msra.mxu1 %v1625_v52  ;;  %1638 = vrsqrt.f32 %v825_v12  ;;  %v959_v38 = vadd.f32 1e-05, %v953_v37 }
 0x39a   : > { %1436 = vmatprep.subr.bf16.mxu1 %v1881_v43 }
 0x39b   : > { %1417 = vmatpush3.bf16.msra.mxu0 %v1618_v49  ;;  %1640 = vrsqrt.f32 %v959_v38 }
 0x39c   : > { %1418 = vmatprep.subr.bf16.mxu0 %v1881_v43 }
 0x39d   : > { %1437 = vmatpush3.bf16.msra.mxu1 %v1626_v54 }
 0x39e   : > { %1438 = vmatprep.subr.bf16.mxu1 %v1881_v43 }
 0x39f   : > { %1419 = vmatpush3.bf16.msra.mxu0 %v1619_v51 }
 0x3a0   : > { %1420 = vmatprep.subr.bf16.mxu0 %v1881_v43 }
 0x3a1   : > { %1439 = vmatpush3.bf16.msra.mxu1 %v1627_v57 }
 0x3a2   : > { %1440 = vmatprep.subr.bf16.mxu1 %v1881_v43 }
 0x3a3   : > { %1421 = vmatpush3.bf16.msra.mxu0 %v1620_v53  ;;  %v1639_v16 = vpop.eup %1638 }
 0x3a4   : > { %1422 = vmatprep.subr.bf16.mxu0 %v1881_v43  ;;  %v830_v18 = vrot.slane %v1639_v16, %v822_v15 }
 0x3a5   : > { %1441 = vmatpush3.bf16.msra.mxu1 %v1628_v58  ;;  %v1641_v39 = vpop.eup %1640 }
 0x3a6   : > { %1442 = vmatprep.subr.bf16.mxu1 %v1881_v43  ;;  %v964_v41 = vrot.slane %v1641_v39, %v822_v15 }
 0x3a7   : > { %1423 = vmatpush3.bf16.msra.mxu0 %v1621_v55 }
 0x3a8   : > { %1448 = vmatprep.subr.bf16.mxu0 %v1881_v43 }
 0x3a9   : > { %1443 = vmatpush3.bf16.msra.mxu1 %v1629_v59 }
 0x3aa   : > { %1425 = vmatmul.mubr.bf16.vlgmr.msra.gmra.mrb[0].mxu0 %v709_v56 }
 0x3ab   : > { %1464 = vmatprep.mubr.msk.bf16.mxu0 %vm1882_vm4, %v1881_v43  ;;  %1449 = vmatpush3.bf16.msra.mxu0 %v1630_v60 }
 0x3ac   : > { %1450 = vmatprep.subr.bf16.mxu0 %v1881_v43 }
 0x3af   : > { %1451 = vmatpush3.bf16.msra.mxu0 %v1631_v61 }
 0x3b0   : > { %1452 = vmatprep.subr.bf16.mxu0 %v1881_v43 }
 0x3b3   : > { %1453 = vmatpush3.bf16.msra.mxu0 %v1632_v62 }
 0x3b4   : > { %1454 = vmatprep.subr.bf16.mxu0 %v1881_v43 }
 0x3b7   : > { %1455 = vmatpush3.bf16.msra.mxu0 %v1633_v63 }
 0x3b8   : > { %1456 = vmatprep.subr.bf16.mxu0 %v1881_v43 }
 0x3bb   : > { %1457 = vmatpush3.bf16.msra.mxu0 %v1634_v5 }
 0x3bc   : > { %1458 = vmatprep.subr.bf16.mxu0 %v1881_v43 }
 0x3bf   : > { %1459 = vmatpush3.bf16.msra.mxu0 %v1635_v31 }
 0x3c0   : > { %1460 = vmatprep.subr.bf16.mxu0 %v1881_v43 }
 0x3c3   : > { %1461 = vmatpush3.bf16.msra.mxu0 %v1636_v32 }
 0x3c4   : > { %1462 = vmatprep.subr.bf16.mxu0 %v1881_v43 }
 0x3c7   : > { %1463 = vmatpush3.bf16.msra.mxu0 %v1637_v0 }
 0x47d   : > { %v808_v19 = vpop.f32.mrb[0].mxu0 }
 0x47e   : > { %v824_v20 = vsub.f32 %v808_v19, %v823_v17  ;;  %v1426_v22 = vpop.f32.mrb[1].mxu0 }
 0x47f   : > { %v811_v23 = vpop.f32.mrb[2].mxu0 }
 0x480   : > { %v831_v24 = vmul.f32 %v830_v18, %v824_v20  ;;  %v1427_v25 = vpop.f32.mrb[3].mxu0 }
 0x482   : > { %v836_v27 = vmul.f32 %v835_v21, %v831_v24 }
 0x484   : > { %v841_v28 = vadd.f32 %v840_v26, %v836_v27 }
 0x486   : > { %v842_v29 = vmax.f32 %v841_v28, 0.0 }
 0x488   : > { %v843_v30 = vpack.c.bf16 %v842_v29, %v842_v29 }
 0x48a   : > { %1445 = vmatmul.mubr.bf16.vlgmr.msra.gmra.mrb[0].mxu1 %v843_v30 }
 0x55d   : > { %v942_v42 = vpop.f32.mrb[0].mxu1 }
 0x55e   : > { %v958_v44 = vsub.f32 %v942_v42, %v957_v40  ;;  %v1446_v45 = vpop.f32.mrb[1].mxu1 }
 0x55f   : > { %v945_v46 = vpop.f32.mrb[2].mxu1 }
 0x560   : > { %v965_v47 = vmul.f32 %v964_v41, %v958_v44  ;;  %v1447_v48 = vpop.f32.mrb[3].mxu1 }
 0x562   : > { %v970_v43 = vmul.f32 %v2172_v2, %v965_v47 }
 0x564   : > { %v975_v49 = vadd.f32 %v2177_v3, %v970_v43 }
 0x566   : > { %v976_v50 = vmax.f32 %v975_v49, 0.0 }
 0x568   : > { %v977_v51 = vpack.c.bf16 %v976_v50, %v976_v50 }
 0x56a   : > { %1465 = vmatmul.mubr.bf16.vlgmr.msra.gmra.mrb[4].mxu0 %v977_v51 }
 0x63d   : > { %v1080_v52 = vpop.f32.mrb[4].mxu0 }
 0x63e   : > { %v1081_v53 = vadd.f32 %v2182_v4, %v1080_v52  ;;  %v1466_v54 = vpop.f32.mrb[5].mxu0 }
 0x63f   : > { %v1083_v55 = vpop.f32.mrb[6].mxu0 }
 0x640   : > { %v1289_v56 = vmul.f32 -1.442695, %v1081_v53  ;;  %v1467_v57 = vpop.f32.mrb[7].mxu0 }
 0x642   : > { %1642 = vpow2.f32 %v1289_v56 }
 0x64c   : > { %v1643_v58 = vpop.eup %1642 }
 0x64d   : > { %v1089_v59 = vadd.f32 1.0, %v1643_v58 }
 0x64f   : > { %1644 = vrcp.f32 %v1089_v59 }
 0x659   : > { %v1645_v60 = vpop.eup %1644 }
 0x65a   : > { %1092 = vst [vmem:[%s2184_s18] sm:$0xff] %v1645_v60 }
 0x65b PF: > { %s2319_s22 = sld [smem:[#allocation18_spill]]  ;;  %s2320_s15 = sld [smem:[#allocation20_spill]] }
 0x65c   : > { %s1107_s9 = sshll.u32 %s2184_s18, 4  ;;  %s1094_s12 = scalar_lea.sflag [#allocation6], %s2140_s5  ;;  %s1108_s9 = int_to_ptr.vmem [resolvable:$true] %s1107_s9 }
 0x65d   : > { %s1760_s27 = scalar_lea.vmem %s1108_s9, 128  ;;  %s1883_s17 = smov [#allocation12]  }
 0x65e   : > { %p1761_p1 = scmp.ne.s32.totalorder %s1108_s9, %s1760_s27  ;;  %s1764_s28 = sshll.u32 %s1883_s17, 4  ;;  %s1765_s28 = int_to_ptr.vmem [resolvable:$false] %s1764_s28 }
 0x65f   : > { %s1766_s11 = scalar_lea.vmem %s1765_s28, 256  ;;  %p1767_p12 = scmp.lt.s32.totalorder %s1108_s9, %s1765_s28 }
 0x660   : > { %p1762_p2 = pnand %p1761_p1, %p2089_p7  ;;  %p1768_p4 = scmp.lt.s32.totalorder %s1766_s11, %s1760_s27 }
 0x661   : > { %s1291_s26 = sshll.u32 %s2319_s22, 7 }
 0x662   : > { %s2238_s30 = scalar_lea.hbm %s2320_s15, %s1291_s26  ;;  %p1763_p8 = pneg %p1762_p2 }
 0x663   : > { %p1769_p13 = por %p1768_p4, %p1767_p12 }
 0x665   : > { %p1770_p9 = pnand %p1769_p13, %p1763_p8 }
 0x667   : > { %1773 = shalt.err (!%p1770_p9)
}
 0x668   : > { %s1774_s5 = scalar_lea.hbm %s2238_s30, 128  ;;  %s1778_s21 = scalar_lea.hbm %s2320_s15, 256 }
 0x669   : > { %p1775_p6 = scmp.ne.s32.totalorder %s2238_s30, %s1774_s5  ;;  %p1779_p5 = scmp.lt.u32.totalorder %s2238_s30, %s2320_s15 }
 0x66a   : > { %p1780_p10 = scmp.lt.u32.totalorder %s1778_s21, %s1774_s5  ;;  %p1782_p1 = scmp.lt.u32.totalorder %s1774_s5, %s2238_s30 }
 0x66b   : > { %p1776_p0 = pnand %p1775_p6, %p2089_p7 }
 0x66c   : > { %p1781_p11 = por %p1780_p10, %p1779_p5 }
 0x66d   : > { %p1777_p3 = pneg %p1776_p0 }
 0x66e   : > { %p1783_p2 = por %p1782_p1, %p1781_p11 }
 0x670   : > { %p1784_p8 = pnand %p1783_p2, %p1777_p3 }
 0x672   : > { %1787 = shalt.err (!%p1784_p8)
}
 0x673   : > { %1482 = dma.vmem_to_hbm [thread:$0]  (%p2089_p7), %s1108_s9, 128, %s2238_s30, %s1094_s12  }
 0x674 PF: > { %s2321_s26 = sld [smem:[#allocation17_spill]]  ;;  %s2322_s7 = sld [smem:[#allocation19_spill]] }
 0x675   : > { %p1509_p12 = scmp.ge.s32.totalorder %s1866_s25, 2 }
 0x67a   : > { %s1119_s13 = sand.u32 1, %s2321_s26   ;;  %p2323_p4 = scmp.ne.s32.totalorder %s2322_s7, 0 }
 0x67b   : > { %s1120_s27 = scalar_lea.sflag [#allocation6], %s1119_s13 }
 0x67c   : > { %p1499_p13 = pnand %p1509_p12, %p2323_p4 }
 0x67e   : > { %1833 = dma.done.wait (!%p1499_p13), %s1120_s27, 128  }
 0x67f   : > { %1835 = vsyncadd (!%p1499_p13), %s1120_s27, 4294967168  ;;  %s23_s25 = sadd.s32 1, %s1866_s25   ;;  %s2324_s18 = smov %s1842_s19 }
 0x680   : > { %p20_p9 = scmp.ge.s32.totalorder %s23_s25, 8   ;;  %s2325_s19 = smov %s1846_s20 }
 0x681   : > { %s2326_s20 = smov %s2096_s16  ;;  %s2327_s21 = smov %s1858_s23 }
 0x682   : > { %s2328_s22 = smov %s1862_s24  ;;  %s2329_s23 = smov %s2332_s8 }
 0x683   : > { %s2330_s24 = smov %s2336_s10  ;;  %22 = sbr.rel (!%p20_p9) target bundleno = 11 (0xb), region = 121 }
 0x68a   :  { %1125 = vsyncpa [#allocation5], 1 }
 0x68b   :  { %1127 = vsyncpa [#allocation5 + $0x1], 1 }
 0x68c   :  { %1128 = vsyncpa [#allocation8], 1 }
 0x68d   :  { %1129 = vsyncpa [#allocation11], 1 }
 0x68e   :  { %1130 = vsyncpa [#allocation6], 1 }
 0x68f   :  { %1132 = vsyncpa [#allocation6 + $0x1], 1 }

</bundles_post_ra>
